<compile_context>
chip_gen: v7x
topology: tpu7x:2x2x1
jax: 0.10.0
libtpu: 0.0.40
codegen_flags: <defaults>
</compile_context>

<pallas_src>
import functools

import jax
import jax.numpy as jnp
from jax.experimental import pallas as pl
from jax.experimental.pallas import tpu as pltpu


def _round_up(x, m):
    return ((x + m - 1) // m) * m


def _choose_tb(B, block_b):
    """Batch tile size: split into >=2 tiles when large enough for 2 TensorCores."""
    half = _round_up((B + 1) // 2, 8)
    if half >= 64:                       # worth giving v7x's second TC its own tile
        return min(block_b, half)
    return min(block_b, _round_up(B, 8))  # tiny batch: single tile


def _write_q(q_ref, q, num_valid, training):
    """Epilogue: lane-dense store; eval mode fuses the ensemble-min."""
    if training:
        q_ref[...] = q
    else:
        lane = jax.lax.broadcasted_iota(jnp.int32, q.shape, 1)
        qv = jnp.where(lane < num_valid, q, jnp.inf)      # mask padded columns
        qmin = jnp.min(qv, axis=-1, keepdims=True)         # (TB, 1)
        q_ref[...] = jnp.broadcast_to(qmin, q_ref.shape)


def _dense_kernel(x_ref, w1_ref, b1_ref, w2_ref, b2_ref, w3_ref, b3_ref, q_ref,
                  *, num_valid, training):
    """All ensembles fused: block-diagonal W2, three lane-aligned MXU matmuls.

    x_ref (TB, Dp)   w1 (Dp, EH)  b1 (1, EH)
                     w2 (EH, EH)  b2 (1, EH)
                     w3 (EH, 128) b3 (1, 128)
    q_ref (TB, 128)
    """
    wdt = w2_ref.dtype  # matmul-input dtype (f32 or bf16); accumulation is f32
    h = jnp.dot(x_ref[...], w1_ref[...], preferred_element_type=jnp.float32) + b1_ref[...]
    h = jnp.maximum(h, 0.0).astype(wdt)          # ReLU in f32, cast only at dot input
    h = jnp.dot(h, w2_ref[...], preferred_element_type=jnp.float32) + b2_ref[...]
    h = jnp.maximum(h, 0.0).astype(wdt)
    q = jnp.dot(h, w3_ref[...], preferred_element_type=jnp.float32) + b3_ref[...]
    _write_q(q_ref, q, num_valid, training)


def _stacked_kernel(x_ref, w1_ref, b1_ref, w2s_ref, b2_ref, w3_ref, b3_ref, q_ref,
                    h2_ref, *, num_ens, hp, num_valid, training):
    """Large-ensemble path: layer 2 as an unrolled per-ensemble loop (stacked W2).

    x_ref (TB, Dp)   w1 (Dp, E*Hp)    b1 (1, E*Hp)
                     w2s (E, Hp, Hp)  b2 (1, E*Hp)
                     w3 (E*Hp, 128)   b3 (1, 128)
    q_ref (TB, 128)  h2_ref (TB, E*Hp) VMEM scratch
    """
    wdt = w2s_ref.dtype
    h = jnp.dot(x_ref[...], w1_ref[...], preferred_element_type=jnp.float32) + b1_ref[...]
    h = jnp.maximum(h, 0.0).astype(wdt)
    for e in range(num_ens):                     # static unroll; lane-aligned slices
        s = e * hp
        h2e = (jnp.dot(h[:, s:s + hp], w2s_ref[e],
                       preferred_element_type=jnp.float32)
               + b2_ref[:, s:s + hp])
        h2_ref[:, s:s + hp] = jnp.maximum(h2e, 0.0).astype(h2_ref.dtype)
    q = (jnp.dot(h2_ref[...], w3_ref[...], preferred_element_type=jnp.float32)
         + b3_ref[...])
    _write_q(q_ref, q, num_valid, training)


def pack_params(params, *, weight_dtype=jnp.float32, lane=128, dense_max_eh=512):
    """Pack per-ensemble weights into lane-aligned fused matrices.

    Returns a dict with mode "dense" (block-diagonal W2) or "stacked" (E, Hp, Hp).
    Biases are always kept in f32.
    """
    w1, b1 = params["w1"], params["b1"]   # (E, D, H), (E, H)
    w2, b2 = params["w2"], params["b2"]   # (E, H, H), (E, H)
    w3, b3 = params["w3"], params["b3"]   # (E, H, 1), (E, 1)
    E, D, H = w1.shape
    assert E <= lane, "num_ensembles must fit in one lane tile"
    Dp = _round_up(D, 8)
    OUTP = lane

    dense = (E * H) <= dense_max_eh
    if dense:
        EH = _round_up(E * H, lane)       # only the *total* is lane-padded
        W1 = jnp.zeros((Dp, EH), weight_dtype)
        B1 = jnp.zeros((1, EH), jnp.float32)
        W2 = jnp.zeros((EH, EH), weight_dtype)
        B2 = jnp.zeros((1, EH), jnp.float32)
        W3 = jnp.zeros((EH, OUTP), weight_dtype)
        B3 = jnp.zeros((1, OUTP), jnp.float32)
        for e in range(E):                # one-time packing cost
            s = e * H
            W1 = W1.at[:D, s:s + H].set(w1[e].astype(weight_dtype))
            B1 = B1.at[0, s:s + H].set(b1[e].astype(jnp.float32))
            W2 = W2.at[s:s + H, s:s + H].set(w2[e].astype(weight_dtype))
            B2 = B2.at[0, s:s + H].set(b2[e].astype(jnp.float32))
            W3 = W3.at[s:s + H, e].set(w3[e][:, 0].astype(weight_dtype))
        B3 = B3.at[0, :E].set(b3[:, 0].astype(jnp.float32))
        return dict(mode="dense", num_ensembles=E, in_dim=D,
                    w1=W1, b1=B1, w2=W2, b2=B2, w3=W3, b3=B3)

    Hp = _round_up(H, lane)               # per-ensemble lane alignment for slicing
    EH = E * Hp
    W1 = jnp.zeros((Dp, EH), weight_dtype)
    B1 = jnp.zeros((1, EH), jnp.float32)
    W2 = jnp.zeros((E, Hp, Hp), weight_dtype)
    B2 = jnp.zeros((1, EH), jnp.float32)
    W3 = jnp.zeros((EH, OUTP), weight_dtype)
    B3 = jnp.zeros((1, OUTP), jnp.float32)
    for e in range(E):
        s = e * Hp
        W1 = W1.at[:D, s:s + H].set(w1[e].astype(weight_dtype))
        B1 = B1.at[0, s:s + H].set(b1[e].astype(jnp.float32))
        W2 = W2.at[e, :H, :H].set(w2[e].astype(weight_dtype))
        B2 = B2.at[0, s:s + H].set(b2[e].astype(jnp.float32))
        W3 = W3.at[s:s + H, e].set(w3[e][:, 0].astype(weight_dtype))
    B3 = B3.at[0, :E].set(b3[:, 0].astype(jnp.float32))
    return dict(mode="stacked", num_ensembles=E, hp=Hp, in_dim=D,
                w1=W1, b1=B1, w2=W2, b2=B2, w3=W3, b3=B3)


def ensemble_min_q_forward(obs, act, packed, training, *, block_b=256):
    assert training is not None and isinstance(training, bool)
    B = obs.shape[0]
    assert obs.shape[1] + act.shape[1] == packed["in_dim"]
    E = packed["num_ensembles"]
    cdt = packed["w1"].dtype              # matmul-input dtype (f32 or bf16)
    Dp = packed["w1"].shape[0]
    OUTP = packed["w3"].shape[1]          # 128 (lane-dense output columns)

    # Concat once (no E-way replication), pad feature dim to the packed Dp.
    x = jnp.concatenate([obs, act], axis=-1).astype(cdt)
    D = x.shape[1]
    if D < Dp:
        x = jnp.pad(x, ((0, 0), (0, Dp - D)))

    TB = _choose_tb(B, block_b)
    B_pad = _round_up(B, TB)
    if B_pad != B:
        x = jnp.pad(x, ((0, B_pad - B), (0, 0)))

    def resident(shape):
        # Full weight block, same index every grid step -> stays resident in VMEM.
        return pl.BlockSpec(shape, lambda i, _n=len(shape): (0,) * _n)

    compiler_params = pltpu.CompilerParams(
        dimension_semantics=("parallel",),          # batch tiles over v7x's 2 TCs
        vmem_limit_bytes=32 * 1024 * 1024)          # v5e scoped default is only 16 MiB

    if packed["mode"] == "dense":
        EH = packed["w2"].shape[0]
        kernel = functools.partial(_dense_kernel, num_valid=E, training=training)
        in_specs = [
            pl.BlockSpec((TB, Dp), lambda i: (i, 0)),
            resident((Dp, EH)), resident((1, EH)),
            resident((EH, EH)), resident((1, EH)),
            resident((EH, OUTP)), resident((1, OUTP)),
        ]
        scratch_shapes = []
    else:
        E_, Hp, _ = packed["w2"].shape
        EH = E_ * Hp
        kernel = functools.partial(_stacked_kernel, num_ens=E_, hp=Hp,
                                   num_valid=E, training=training)
        in_specs = [
            pl.BlockSpec((TB, Dp), lambda i: (i, 0)),
            resident((Dp, EH)), resident((1, EH)),
            resident((E_, Hp, Hp)), resident((1, EH)),
            resident((EH, OUTP)), resident((1, OUTP)),
        ]
        scratch_shapes = [pltpu.VMEM((TB, EH), cdt)]

    q = pl.pallas_call(
        kernel,
        out_shape=jax.ShapeDtypeStruct((B_pad, OUTP), jnp.float32),
        grid=(B_pad // TB,),
        in_specs=in_specs,
        out_specs=pl.BlockSpec((TB, OUTP), lambda i: (i, 0)),
        scratch_shapes=scratch_shapes,
        compiler_params=compiler_params,
    )(x, packed["w1"], packed["b1"], packed["w2"], packed["b2"],
      packed["w3"], packed["b3"])

    if training:
        return q[:B, :E].T                 # (E, B)
    return q[:B, 0]                        # (B,) — min was fused into the kernel


def init_params(key, ob_dim, ac_dim, mlp_hidden, num_ensembles):
    """Deterministic synthetic init (PyTorch-Linear-style uniform bounds)."""
    in_dim = ob_dim + ac_dim
    ks = jax.random.split(key, 6)

    def unif(k, shape, fan_in):
        bound = 1.0 / jnp.sqrt(jnp.float32(fan_in))
        return jax.random.uniform(k, shape, jnp.float32, -bound, bound)

    return {
        "w1": unif(ks[0], (num_ensembles, in_dim, mlp_hidden), in_dim),
        "b1": unif(ks[1], (num_ensembles, mlp_hidden), in_dim),
        "w2": unif(ks[2], (num_ensembles, mlp_hidden, mlp_hidden), mlp_hidden),
        "b2": unif(ks[3], (num_ensembles, mlp_hidden), mlp_hidden),
        "w3": unif(ks[4], (num_ensembles, mlp_hidden, 1), mlp_hidden),
        "b3": unif(ks[5], (num_ensembles, 1), mlp_hidden),
    }


def reference_forward(obs, act, params, training):
    """Pure-JAX reference for correctness checking."""
    x = jnp.concatenate([obs, act], axis=-1).astype(jnp.float32)
    x = jnp.broadcast_to(x[None], (params["w1"].shape[0],) + x.shape)
    h = jax.nn.relu(jnp.einsum("ebd,edh->ebh", x, params["w1"]) + params["b1"][:, None, :])
    h = jax.nn.relu(jnp.einsum("ebh,ehk->ebk", h, params["w2"]) + params["b2"][:, None, :])
    q = jnp.einsum("ebh,ehk->ebk", h, params["w3"]) + params["b3"][:, None, :]
    q = q[..., 0]                                   # squeeze -> (E, B)
    return q if training else jnp.min(q, axis=0)


if __name__ == "__main__":
    key = jax.random.PRNGKey(0)

    # ---------------- Config 1: small / shipped shape -> "dense" path --------------
    ob_dim, ac_dim, mlp_hidden, num_ensembles = 16, 8, 32, 2
    batch = 8
    k_obs, k_act, k_params, k2 = jax.random.split(key, 4)
    obs = jax.random.normal(k_obs, (batch, ob_dim), jnp.float32)
    act = jax.random.normal(k_act, (batch, ac_dim), jnp.float32)
    params = init_params(k_params, ob_dim, ac_dim, mlp_hidden, num_ensembles)

    packed_f32 = pack_params(params, weight_dtype=jnp.float32)
    assert packed_f32["mode"] == "dense"
    q_train = jax.block_until_ready(
        ensemble_min_q_forward(obs, act, packed_f32, training=True))
    q_eval = jax.block_until_ready(
        ensemble_min_q_forward(obs, act, packed_f32, training=False))

    ref_train = reference_forward(obs, act, params, training=True)
    ref_eval = reference_forward(obs, act, params, training=False)
    assert q_train.shape == (num_ensembles, batch)
    assert q_eval.shape == (batch,)
    assert jnp.allclose(q_train, ref_train, atol=1e-5, rtol=1e-5)
    assert jnp.allclose(q_eval, ref_eval, atol=1e-5, rtol=1e-5)

    # bf16 weight/activation path (f32 accumulation), loose tolerance.
    packed_bf16 = pack_params(params, weight_dtype=jnp.bfloat16)
    q_train_bf16 = jax.block_until_ready(
        ensemble_min_q_forward(obs, act, packed_bf16, training=True))
    assert q_train_bf16.shape == (num_ensembles, batch)
    assert jnp.allclose(q_train_bf16, ref_train, atol=5e-2, rtol=5e-2)

    # ---------------- Config 2: larger ensemble/hidden -> "stacked" path -----------
    ob2, ac2, hid2, ens2, batch2 = 16, 8, 256, 4, 16
    k_obs2, k_act2, k_params2 = jax.random.split(k2, 3)
    obs2 = jax.random.normal(k_obs2, (batch2, ob2), jnp.float32)
    act2 = jax.random.normal(k_act2, (batch2, ac2), jnp.float32)
    params2 = init_params(k_params2, ob2, ac2, hid2, ens2)

    packed2 = pack_params(params2, weight_dtype=jnp.float32)
    assert packed2["mode"] == "stacked"
    q2_train = jax.block_until_ready(
        ensemble_min_q_forward(obs2, act2, packed2, training=True))
    q2_eval = jax.block_until_ready(
        ensemble_min_q_forward(obs2, act2, packed2, training=False))

    ref2_train = reference_forward(obs2, act2, params2, training=True)
    ref2_eval = reference_forward(obs2, act2, params2, training=False)
    assert q2_train.shape == (ens2, batch2)
    assert q2_eval.shape == (batch2,)
    assert jnp.allclose(q2_train, ref2_train, atol=2e-4, rtol=2e-4)
    assert jnp.allclose(q2_eval, ref2_eval, atol=2e-4, rtol=2e-4)

    print("KERNEL_OK")
</pallas_src>

<mosaic_0001>
module attributes {stable_mosaic.version = 11 : i64} {
  func.func @_dense_kernel(%arg0: i32, %arg1: memref<8x24xf32, #tpu.memory_space<vmem>>, %arg2: memref<24x128xf32, #tpu.memory_space<vmem>>, %arg3: memref<1x128xf32, #tpu.memory_space<vmem>>, %arg4: memref<128x128xf32, #tpu.memory_space<vmem>>, %arg5: memref<1x128xf32, #tpu.memory_space<vmem>>, %arg6: memref<128x128xf32, #tpu.memory_space<vmem>>, %arg7: memref<1x128xf32, #tpu.memory_space<vmem>>, %arg8: memref<8x128xf32, #tpu.memory_space<vmem>>) attributes {dimension_semantics = [#tpu.dimension_semantics<parallel>], iteration_bounds = array<i64: 1>, scalar_prefetch = 0 : i64, scratch_operands = 0 : i64, tpu.core_type = #tpu.core_type<tc>, window_params = [{transform_indices = @transform_0, window_bounds = array<i64: 8, 24>}, {pipeline_mode = #tpu.pipeline_mode<synchronous>, transform_indices = @transform_1, window_bounds = array<i64: 24, 128>}, {pipeline_mode = #tpu.pipeline_mode<synchronous>, transform_indices = @transform_2, window_bounds = array<i64: 1, 128>}, {pipeline_mode = #tpu.pipeline_mode<synchronous>, transform_indices = @transform_3, window_bounds = array<i64: 128, 128>}, {pipeline_mode = #tpu.pipeline_mode<synchronous>, transform_indices = @transform_4, window_bounds = array<i64: 1, 128>}, {pipeline_mode = #tpu.pipeline_mode<synchronous>, transform_indices = @transform_5, window_bounds = array<i64: 128, 128>}, {pipeline_mode = #tpu.pipeline_mode<synchronous>, transform_indices = @transform_6, window_bounds = array<i64: 1, 128>}, {transform_indices = @transform_7, window_bounds = array<i64: 8, 128>}]} {
    %c0 = arith.constant 0 : index
    %c0_0 = arith.constant 0 : index
    %0 = vector.load %arg1[%c0, %c0_0] : memref<8x24xf32, #tpu.memory_space<vmem>>, vector<8x24xf32>
    %c0_1 = arith.constant 0 : index
    %c0_2 = arith.constant 0 : index
    %1 = vector.load %arg2[%c0_1, %c0_2] : memref<24x128xf32, #tpu.memory_space<vmem>>, vector<24x128xf32>
    %cst = arith.constant dense<0.000000e+00> : vector<8x128xf32>
    %2 = tpu.matmul %0, %1, %cst {dimension_numbers = #tpu.dot_dimension_numbers<[1], [0], [0], [1], [0, 0, 1, 1], [], []>} : vector<8x24xf32>, vector<24x128xf32>, vector<8x128xf32> -> vector<8x128xf32>
    %c0_3 = arith.constant 0 : index
    %c0_4 = arith.constant 0 : index
    %3 = vector.load %arg3[%c0_3, %c0_4] : memref<1x128xf32, #tpu.memory_space<vmem>>, vector<1x128xf32>
    %4 = vector.broadcast %3 : vector<1x128xf32> to vector<8x128xf32>
    %5 = arith.addf %2, %4 : vector<8x128xf32>
    %cst_5 = arith.constant 0.000000e+00 : f32
    %6 = vector.broadcast %cst_5 : f32 to vector<8x128xf32>
    %7 = arith.maximumf %5, %6 : vector<8x128xf32>
    %c0_6 = arith.constant 0 : index
    %c0_7 = arith.constant 0 : index
    %8 = vector.load %arg4[%c0_6, %c0_7] : memref<128x128xf32, #tpu.memory_space<vmem>>, vector<128x128xf32>
    %cst_8 = arith.constant dense<0.000000e+00> : vector<8x128xf32>
    %9 = tpu.matmul %7, %8, %cst_8 {dimension_numbers = #tpu.dot_dimension_numbers<[1], [0], [0], [1], [0, 0, 1, 1], [], []>} : vector<8x128xf32>, vector<128x128xf32>, vector<8x128xf32> -> vector<8x128xf32>
    %c0_9 = arith.constant 0 : index
    %c0_10 = arith.constant 0 : index
    %10 = vector.load %arg5[%c0_9, %c0_10] : memref<1x128xf32, #tpu.memory_space<vmem>>, vector<1x128xf32>
    %11 = vector.broadcast %10 : vector<1x128xf32> to vector<8x128xf32>
    %12 = arith.addf %9, %11 : vector<8x128xf32>
    %cst_11 = arith.constant 0.000000e+00 : f32
    %13 = vector.broadcast %cst_11 : f32 to vector<8x128xf32>
    %14 = arith.maximumf %12, %13 : vector<8x128xf32>
    %c0_12 = arith.constant 0 : index
    %c0_13 = arith.constant 0 : index
    %15 = vector.load %arg6[%c0_12, %c0_13] : memref<128x128xf32, #tpu.memory_space<vmem>>, vector<128x128xf32>
    %cst_14 = arith.constant dense<0.000000e+00> : vector<8x128xf32>
    %16 = tpu.matmul %14, %15, %cst_14 {dimension_numbers = #tpu.dot_dimension_numbers<[1], [0], [0], [1], [0, 0, 1, 1], [], []>} : vector<8x128xf32>, vector<128x128xf32>, vector<8x128xf32> -> vector<8x128xf32>
    %c0_15 = arith.constant 0 : index
    %c0_16 = arith.constant 0 : index
    %17 = vector.load %arg7[%c0_15, %c0_16] : memref<1x128xf32, #tpu.memory_space<vmem>>, vector<1x128xf32>
    %18 = vector.broadcast %17 : vector<1x128xf32> to vector<8x128xf32>
    %19 = arith.addf %16, %18 : vector<8x128xf32>
    %c0_17 = arith.constant 0 : index
    %c0_18 = arith.constant 0 : index
    %20 = vector.load %arg8[%c0_17, %c0_18] : memref<8x128xf32, #tpu.memory_space<vmem>>, vector<8x128xf32>
    tpu.vector_store %arg8[%c0_17, %c0_18], %19 {strides = array<i32>} : memref<8x128xf32, #tpu.memory_space<vmem>>, vector<8x128xf32>,
    return
  }
  func.func @transform_0(%arg0: i32) -> (i32, i32) {
    %c0_i32 = arith.constant 0 : i32
    %c0_i32_0 = arith.constant 0 : i32
    return %arg0, %c0_i32 : i32, i32
  }
  func.func @transform_1(%arg0: i32) -> (i32, i32) {
    %c0_i32 = arith.constant 0 : i32
    %c0_i32_0 = arith.constant 0 : i32
    %c0_i32_1 = arith.constant 0 : i32
    return %c0_i32, %c0_i32_0 : i32, i32
  }
  func.func @transform_2(%arg0: i32) -> (i32, i32) {
    %c0_i32 = arith.constant 0 : i32
    %c0_i32_0 = arith.constant 0 : i32
    %c0_i32_1 = arith.constant 0 : i32
    return %c0_i32, %c0_i32_0 : i32, i32
  }
  func.func @transform_3(%arg0: i32) -> (i32, i32) {
    %c0_i32 = arith.constant 0 : i32
    %c0_i32_0 = arith.constant 0 : i32
    %c0_i32_1 = arith.constant 0 : i32
    return %c0_i32, %c0_i32_0 : i32, i32
  }
  func.func @transform_4(%arg0: i32) -> (i32, i32) {
    %c0_i32 = arith.constant 0 : i32
    %c0_i32_0 = arith.constant 0 : i32
    %c0_i32_1 = arith.constant 0 : i32
    return %c0_i32, %c0_i32_0 : i32, i32
  }
  func.func @transform_5(%arg0: i32) -> (i32, i32) {
    %c0_i32 = arith.constant 0 : i32
    %c0_i32_0 = arith.constant 0 : i32
    %c0_i32_1 = arith.constant 0 : i32
    return %c0_i32, %c0_i32_0 : i32, i32
  }
  func.func @transform_6(%arg0: i32) -> (i32, i32) {
    %c0_i32 = arith.constant 0 : i32
    %c0_i32_0 = arith.constant 0 : i32
    %c0_i32_1 = arith.constant 0 : i32
    return %c0_i32, %c0_i32_0 : i32, i32
  }
  func.func @transform_7(%arg0: i32) -> (i32, i32) {
    %c0_i32 = arith.constant 0 : i32
    %c0_i32_0 = arith.constant 0 : i32
    return %arg0, %c0_i32 : i32, i32
  }
}

</mosaic_0001>

<bundles_post_ra>
// kernel: tpu_custom_call.1
= control target key start
LH: loop header
LB: loop body
LE: loop exit
PB: predicated region body
PF: predicated region fallthrough
CT: control target
= control target key end

     0   :  { %12 = vsyncpa [#allocation3], 0  ;;  %s819_s0 = inlined_call_operand.hbm [shape: f32[8,24], index: 0, kind: input, shape index: {}]   ;;  %s820_s1 = inlined_call_operand.hbm [shape: f32[24,128], index: 1, kind: input, shape index: {}]   ;;  %s821_s2 = inlined_call_operand.vmem [shape: f32[1,128], index: 2, kind: input, shape index: {}]   ;;  %s822_s3 = inlined_call_operand.hbm [shape: f32[128,128], index: 3, kind: input, shape index: {}]   ;;  %s823_s4 = inlined_call_operand.vmem [shape: f32[1,128], index: 4, kind: input, shape index: {}]   ;;  %s824_s5 = inlined_call_operand.hbm [shape: f32[128,128], index: 5, kind: input, shape index: {}]   ;;  %s825_s6 = inlined_call_operand.vmem [shape: f32[1,128], index: 6, kind: input, shape index: {}]   ;;  %s826_s7 = inlined_call_operand.hbm [shape: f32[8,128], index: 7, kind: output, shape index: {}]  }
   0x1   :  { %13 = vsyncpa [#allocation6], 0 }
   0x2   :  { %14 = vsyncpa [#allocation9], 0 }
   0x3   :  { %15 = vsyncpa [#allocation4], 0  ;;  %s671_s24 = smov [#allocation5]   ;;  %s553_s28 = scalar_lea.hbm %s820_s1, 384 }
   0x4   :  { %s31_s25 = sshll.u32 %s671_s24, 4  ;;  %p554_p0 = scmp.ne.s32.totalorder %s820_s1, %s553_s28  ;;  %s32_s25 = int_to_ptr.vmem [resolvable:$true] %s31_s25 }
   0x5   :  { %p557_p1 = scmp.lt.u32.totalorder %s553_s28, %s820_s1 }
   0x7   :  { %p559_p2 = pnand %p557_p1, %p554_p0 }
   0x9   :  { %562 = shalt.err (!%p559_p2)
}
   0xa   :  { %s563_s10 = scalar_lea.vmem %s32_s25, 384  ;;  %p568_p4 = scmp.lt.s32.totalorder %s32_s25, %s32_s25 }
   0xb   :  { %p564_p3 = scmp.ne.s32.totalorder %s32_s25, %s563_s10  ;;  %p569_p5 = scmp.lt.s32.totalorder %s563_s10, %s563_s10 }
   0xd   :  { %p570_p6 = por %p569_p5, %p568_p4 }
   0xf   :  { %p571_p7 = pnand %p570_p6, %p564_p3 }
  0x11   :  { %574 = shalt.err (!%p571_p7)
}
  0x12   :  { %s672_s11 = smov 128   ;;  %s673_s12 = smov 8  }
  0x13   :  { %37 = dma.hbm_to_vmem [thread:$0]  %s820_s1, 384, %s32_s25, [#allocation6], %s672_s11, %s672_s11, %s673_s12  }
  0x14   :  { %s674_s15 = smov [#allocation2]   ;;  %s675_s17 = smov [#allocation7]  }
  0x15   :  { %s22_s16 = sshll.u32 %s674_s15, 4  ;;  %s45_s18 = sshll.u32 %s675_s17, 4  ;;  %s23_s16 = int_to_ptr.vmem [resolvable:$true] %s22_s16  ;;  %s46_s18 = int_to_ptr.vmem [resolvable:$true] %s45_s18 }
  0x16   :  { %s575_s21 = scalar_lea.hbm %s819_s0, 128 }
  0x17   :  { %p576_p8 = scmp.ne.s32.totalorder %s819_s0, %s575_s21  ;;  %p579_p9 = scmp.lt.u32.totalorder %s575_s21, %s819_s0 }
  0x19   :  { %p581_p10 = pnand %p579_p9, %p576_p8 }
  0x1b   :  { %584 = shalt.err (!%p581_p10)
}
  0x1c   :  { %s585_s1 = scalar_lea.vmem %s23_s16, 128  ;;  %p590_p12 = scmp.lt.s32.totalorder %s23_s16, %s23_s16 }
  0x1d   :  { %p586_p11 = scmp.ne.s32.totalorder %s23_s16, %s585_s1  ;;  %p591_p13 = scmp.lt.s32.totalorder %s585_s1, %s585_s1 }
  0x1f   :  { %p592_p0 = por %p591_p13, %p590_p12 }
  0x21   :  { %p593_p1 = pnand %p592_p0, %p586_p11 }
  0x23   :  { %596 = shalt.err (!%p593_p1)
}
  0x24   :  { %25 = dma.hbm_to_vmem [thread:$0]  %s819_s0, 128, %s23_s16, [#allocation3]  }
  0x25   :  { %s597_s30 = scalar_lea.hbm %s822_s3, 2048 }
  0x26   :  { %p598_p2 = scmp.ne.s32.totalorder %s822_s3, %s597_s30  ;;  %p601_p3 = scmp.lt.u32.totalorder %s597_s30, %s822_s3 }
  0x28   :  { %p603_p4 = pnand %p601_p3, %p598_p2 }
  0x2a   :  { %606 = shalt.err (!%p603_p4)
}
  0x2b   :  { %s607_s14 = scalar_lea.vmem %s46_s18, 2048  ;;  %p612_p6 = scmp.lt.s32.totalorder %s46_s18, %s46_s18 }
  0x2c   :  { %p608_p5 = scmp.ne.s32.totalorder %s46_s18, %s607_s14  ;;  %p613_p7 = scmp.lt.s32.totalorder %s607_s14, %s607_s14 }
  0x2e   :  { %p614_p8 = por %p613_p7, %p612_p6 }
  0x30   :  { %p615_p9 = pnand %p614_p8, %p608_p5 }
  0x32   :  { %618 = shalt.err (!%p615_p9)
}
  0x33   :  { %51 = dma.hbm_to_vmem [thread:$0]  %s822_s3, 2048, %s46_s18, [#allocation6], %s672_s11, %s672_s11, %s673_s12  }
  0x34   :  { %s676_s16 = smov [#allocation8]   ;;  %s619_s21 = scalar_lea.hbm %s824_s5, 2048 }
  0x35   :  { %s59_s17 = sshll.u32 %s676_s16, 4  ;;  %p620_p10 = scmp.ne.s32.totalorder %s824_s5, %s619_s21  ;;  %s60_s17 = int_to_ptr.vmem [resolvable:$true] %s59_s17 }
  0x36   :  { %p623_p11 = scmp.lt.u32.totalorder %s619_s21, %s824_s5 }
  0x38   :  { %p625_p12 = pnand %p623_p11, %p620_p10 }
  0x3a   :  { %628 = shalt.err (!%p625_p12)
}
  0x3b   :  { %s629_s1 = scalar_lea.vmem %s60_s17, 2048  ;;  %p634_p0 = scmp.lt.s32.totalorder %s60_s17, %s60_s17 }
  0x3c   :  { %p630_p13 = scmp.ne.s32.totalorder %s60_s17, %s629_s1  ;;  %p635_p1 = scmp.lt.s32.totalorder %s629_s1, %s629_s1 }
  0x3e   :  { %p636_p2 = por %p635_p1, %p634_p0 }
  0x40   :  { %p637_p3 = pnand %p636_p2, %p630_p13 }
  0x42   :  { %640 = shalt.err (!%p637_p3)
}
  0x43   :  { %65 = dma.hbm_to_vmem [thread:$0]  %s824_s5, 2048, %s60_s17, [#allocation9], %s672_s11, %s672_s11, %s673_s12  }
  0x44   :  { %663 = dma.done.wait [#allocation3], 128  }
  0x45   :  { %664 = vsyncadd [#allocation3], 4294967168 }
  0x46   :  { %665 = dma.done.wait [#allocation6], 2432  }
  0x47   :  { %666 = vsyncadd [#allocation6], 4294964864 }
  0x48   :  { %667 = dma.done.wait [#allocation9], 2048  }
  0x49   :  { %668 = vsyncadd [#allocation9], 4294965248  ;;  %v677_v0 = vmov 0.0|0.0   ;;  %vm678_vm0 = vmmov 0   ;;  %v679_v1 = vmov 0.0   ;;  %v81_v2 = vld [vmem:[#allocation5] sm:$0xff] }
  0x4a   :  { %492 = vmatprep.subr.bf16.mxu0 %v677_v0  ;;  %419 = vmatprep.mubr.msk.f32.mxu0 %vm678_vm0, %v679_v1  ;;  %v82_v3 = vld [vmem:[#allocation5 + $0x8] sm:$0xff]  ;;  %v166_v5 = vld [vmem:[#allocation7] sm:$0xff]  ;;  %v167_v6 = vld [vmem:[#allocation7 + $0x8] sm:$0xff]  ;;  %vm91_vm1 = vcmask 195584   ;;  %s680_s28 = smov [#allocation10]  }
  0x4b   :  { %495 = vmatprep.subr.bf16.mxu1 %v677_v0  ;;  %454 = vmatprep.mubr.msk.f32.mxu1 %vm678_vm0, %v679_v1  ;;  %v493_v4 = vpack.c.bf16 %v82_v3, %v81_v2  ;;  %v496_v7 = vpack.c.bf16 %v167_v6, %v166_v5  ;;  %v168_v8 = vld [vmem:[#allocation7 + $0x10] sm:$0xff]  ;;  %v169_v9 = vld [vmem:[#allocation7 + $0x18] sm:$0xff]  ;;  %v80_v12 = vld [vmem:[#allocation2] sm:$0xff]  ;;  %s360_s29 = sshll.u32 %s680_s28, 4  ;;  %s361_s29 = int_to_ptr.vmem [resolvable:$true] %s360_s29 }
  0x4c   :  { %v83_v10 = vld [vmem:[#allocation5 + $0x10] sm:$0xff]  ;;  %v499_v11 = vpack.c.bf16 %v169_v9, %v168_v8  ;;  %v170_v13 = vld [vmem:[#allocation7 + $0x20] sm:$0xff]  ;;  %v171_v14 = vld [vmem:[#allocation7 + $0x28] sm:$0xff]  ;;  %s641_s30 = scalar_lea.vmem %s361_s29, 128  ;;  %p646_p5 = scmp.lt.s32.totalorder %s361_s29, %s361_s29 }
  0x4d   :  { %494 = vmatpush3.bf16.msra.mxu0 %v493_v4  ;;  %497 = vmatpush3.bf16.msra.mxu1 %v496_v7  ;;  %v502_v15 = vpack.c.bf16 %v171_v14, %v170_v13  ;;  %v172_v16 = vld [vmem:[#allocation7 + $0x30] sm:$0xff]  ;;  %v173_v17 = vld [vmem:[#allocation7 + $0x38] sm:$0xff]  ;;  %v174_v19 = vld [vmem:[#allocation7 + $0x40] sm:$0xff]  ;;  %p642_p4 = scmp.ne.s32.totalorder %s361_s29, %s641_s30  ;;  %p647_p6 = scmp.lt.s32.totalorder %s641_s30, %s641_s30 }
  0x4e   :  { %417 = vmatprep.subr.mxu0 %v679_v1  ;;  %498 = vmatprep.subr.bf16.mxu1 %v677_v0  ;;  %v505_v18 = vpack.c.bf16 %v173_v17, %v172_v16  ;;  %v175_v20 = vld [vmem:[#allocation7 + $0x48] sm:$0xff]  ;;  %v176_v22 = vld [vmem:[#allocation7 + $0x50] sm:$0xff]  ;;  %v177_v23 = vld [vmem:[#allocation7 + $0x58] sm:$0xff] }
  0x4f   :  { %v508_v21 = vpack.c.bf16 %v175_v20, %v174_v19  ;;  %v511_v24 = vpack.c.bf16 %v177_v23, %v176_v22  ;;  %v178_v25 = vld [vmem:[#allocation7 + $0x60] sm:$0xff]  ;;  %v179_v26 = vld [vmem:[#allocation7 + $0x68] sm:$0xff]  ;;  %v180_v28 = vld [vmem:[#allocation7 + $0x70] sm:$0xff]  ;;  %p648_p7 = por %p647_p6, %p646_p5 }
  0x50   :  { %v514_v27 = vpack.c.bf16 %v179_v26, %v178_v25  ;;  %v181_v29 = vld [vmem:[#allocation7 + $0x78] sm:$0xff]  ;;  %v260_v31 = vld [vmem:[#allocation8] sm:$0xff]  ;;  %v261_v32 = vld [vmem:[#allocation8 + $0x8] sm:$0xff] }
  0x51   :  { %418 = vmatpush3.msra.mxu0 %v83_v10  ;;  %500 = vmatpush3.bf16.msra.mxu1 %v499_v11  ;;  %v517_v30 = vpack.c.bf16 %v181_v29, %v180_v28  ;;  %v262_v33 = vld [vmem:[#allocation8 + $0x10] sm:$0xff]  ;;  %v520_v34 = vpack.c.bf16 %v261_v32, %v260_v31  ;;  %v263_v35 = vld [vmem:[#allocation8 + $0x18] sm:$0xff]  ;;  %v264_v37 = vld [vmem:[#allocation8 + $0x20] sm:$0xff]  ;;  %p649_p8 = pnand %p648_p7, %p642_p4 }
  0x52   :  { %420 = vmatmul.mubr.msk.f32.vlgmr.msra.gmra.mrb[0].mxu0 %vm91_vm1, %v80_v12  ;;  %501 = vmatprep.subr.bf16.mxu1 %v677_v0  ;;  %v523_v36 = vpack.c.bf16 %v263_v35, %v262_v33  ;;  %v265_v38 = vld [vmem:[#allocation8 + $0x28] sm:$0xff]  ;;  %v266_v40 = vld [vmem:[#allocation8 + $0x30] sm:$0xff]  ;;  %v267_v41 = vld [vmem:[#allocation8 + $0x38] sm:$0xff] }
  0x53   :  { %519 = vmatprep.subr.bf16.mxu0 %v677_v0  ;;  %489 = vmatprep.mubr.msk.f32.mxu0 %vm678_vm0, %v679_v1  ;;  %v526_v39 = vpack.c.bf16 %v265_v38, %v264_v37  ;;  %v529_v42 = vpack.c.bf16 %v267_v41, %v266_v40  ;;  %v268_v43 = vld [vmem:[#allocation8 + $0x40] sm:$0xff]  ;;  %v269_v44 = vld [vmem:[#allocation8 + $0x48] sm:$0xff]  ;;  %v270_v46 = vld [vmem:[#allocation8 + $0x50] sm:$0xff] }
  0x54   :  { %521 = vmatpush3.bf16.msra.mxu0 %v520_v34  ;;  %v532_v45 = vpack.c.bf16 %v269_v44, %v268_v43  ;;  %v271_v47 = vld [vmem:[#allocation8 + $0x58] sm:$0xff]  ;;  %v272_v49 = vld [vmem:[#allocation8 + $0x60] sm:$0xff]  ;;  %v273_v50 = vld [vmem:[#allocation8 + $0x68] sm:$0xff] }
  0x55   :  { %503 = vmatpush3.bf16.msra.mxu1 %v502_v15  ;;  %522 = vmatprep.subr.bf16.mxu0 %v677_v0  ;;  %v535_v48 = vpack.c.bf16 %v271_v47, %v270_v46  ;;  %v538_v51 = vpack.c.bf16 %v273_v50, %v272_v49  ;;  %v371_v52 = vld [vmem:[%s821_s2] ss:$0 sm:$0xff]  ;;  %v274_v57 = vld [vmem:[#allocation8 + $0x70] sm:$0xff]  ;;  %v275_v58 = vld [vmem:[#allocation8 + $0x78] sm:$0xff] }
  0x56   :  { %504 = vmatprep.subr.bf16.mxu1 %v677_v0  ;;  %v541_v59 = vpack.c.bf16 %v275_v58, %v274_v57  ;;  %v373_v60 = vld [vmem:[%s823_s4] ss:$0 sm:$0xff] }
  0x57   :  { %v374_v1 = vld [vmem:[%s825_s6] ss:$0 sm:$0xff] }
  0x58   :  { %524 = vmatpush3.bf16.msra.mxu0 %v523_v36 }
  0x59   :  { %506 = vmatpush3.bf16.msra.mxu1 %v505_v18  ;;  %525 = vmatprep.subr.bf16.mxu0 %v677_v0 }
  0x5a   :  { %507 = vmatprep.subr.bf16.mxu1 %v677_v0 }
  0x5c   :  { %527 = vmatpush3.bf16.msra.mxu0 %v526_v39 }
  0x5d   :  { %509 = vmatpush3.bf16.msra.mxu1 %v508_v21  ;;  %528 = vmatprep.subr.bf16.mxu0 %v677_v0 }
  0x5e   :  { %510 = vmatprep.subr.bf16.mxu1 %v677_v0 }
  0x60   :  { %530 = vmatpush3.bf16.msra.mxu0 %v529_v42 }
  0x61   :  { %512 = vmatpush3.bf16.msra.mxu1 %v511_v24  ;;  %531 = vmatprep.subr.bf16.mxu0 %v677_v0 }
  0x62   :  { %513 = vmatprep.subr.bf16.mxu1 %v677_v0 }
  0x64   :  { %533 = vmatpush3.bf16.msra.mxu0 %v532_v45 }
  0x65   :  { %515 = vmatpush3.bf16.msra.mxu1 %v514_v27  ;;  %534 = vmatprep.subr.bf16.mxu0 %v677_v0 }
  0x66   :  { %516 = vmatprep.subr.bf16.mxu1 %v677_v0 }
  0x68   :  { %536 = vmatpush3.bf16.msra.mxu0 %v535_v48 }
  0x69   :  { %518 = vmatpush3.bf16.msra.mxu1 %v517_v30  ;;  %537 = vmatprep.subr.bf16.mxu0 %v677_v0 }
  0x6c   :  { %539 = vmatpush3.bf16.msra.mxu0 %v538_v51 }
  0x6d   :  { %540 = vmatprep.subr.bf16.mxu0 %v677_v0 }
  0x70   :  { %542 = vmatpush3.bf16.msra.mxu0 %v541_v59 }
 0x125   :  { %v161_v53 = vpop.f32.mrb[0].mxu0 }
 0x126   :  { %v162_v54 = vadd.f32 %v371_v52, %v161_v53  ;;  %v421_v55 = vpop.f32.mrb[1].mxu0 }
 0x128   :  { %v165_v56 = vmax.f32 %v162_v54, 0.0 }
 0x12a   :  { %455 = vmatmul.mubr.f32.vlgmr.msra.gmra.mrb[0].mxu1 %v165_v56 }
 0x1fd   :  { %v255_v61 = vpop.f32.mrb[0].mxu1 }
 0x1fe   :  { %v256_v62 = vadd.f32 %v373_v60, %v255_v61  ;;  %v456_v63 = vpop.f32.mrb[1].mxu1 }
 0x200   :  { %v259_v0 = vmax.f32 %v256_v62, 0.0 }
 0x202   :  { %490 = vmatmul.mubr.f32.vlgmr.msra.gmra.mrb[2].mxu0 %v259_v0 }
 0x2d5   :  { %v349_v2 = vpop.f32.mrb[2].mxu0 }
 0x2d6   :  { %v350_v3 = vadd.f32 %v374_v1, %v349_v2  ;;  %v491_v4 = vpop.f32.mrb[3].mxu0 }
 0x2d8   :  { %353 = vst [vmem:[#allocation10] sm:$0xff] %v350_v3 }
 0x2d9   :  { %652 = shalt.err (!%p649_p8)
}
 0x2da   :  { %s653_s9 = scalar_lea.hbm %s826_s7, 128 }
 0x2db   :  { %p654_p9 = scmp.ne.s32.totalorder %s826_s7, %s653_s9  ;;  %p657_p10 = scmp.lt.u32.totalorder %s653_s9, %s826_s7 }
 0x2dd   :  { %p659_p11 = pnand %p657_p10, %p654_p9 }
 0x2df   :  { %662 = shalt.err (!%p659_p11)
}
 0x2e0   :  { %363 = dma.vmem_to_hbm [thread:$0]  %s361_s29, 128, %s826_s7, [#allocation4]  }
 0x2e1   :  { %669 = dma.done.wait [#allocation4], 128  }
 0x2e2   :  { %670 = vsyncadd [#allocation4], 4294967168 }
 0x2e3   :  { %367 = vsyncpa [#allocation3], 1 }
 0x2e4   :  { %368 = vsyncpa [#allocation6], 1 }
 0x2e5   :  { %369 = vsyncpa [#allocation9], 1 }
 0x2e6   :  { %370 = vsyncpa [#allocation4], 1 }

</bundles_post_ra>
